<compile_context>
chip_gen: v7x
topology: tpu7x:2x2x1
jax: 0.10.0
libtpu: 0.0.40
codegen_flags: <defaults>
</compile_context>

<pallas_src>
import functools
import math

import jax
import jax.numpy as jnp
from jax.experimental import pallas as pl
from jax.experimental.pallas import tpu as pltpu


def _round_up(n: int, m: int) -> int:
    return ((n + m - 1) // m) * m


def layernorm_kernel(x_ref, a_ref, b_ref, o_ref, *, n_features: int, eps: float):
    """x_ref: (block_rows, E); a_ref, b_ref: (1, E); o_ref: (block_rows, E)."""
    x = x_ref[...].astype(jnp.float32)      # (R, E) compute in f32
    a = a_ref[...].astype(jnp.float32)      # (1, E)
    b = b_ref[...].astype(jnp.float32)      # (1, E)

    inv_n = jnp.float32(1.0 / n_features)
    inv_nm1 = jnp.float32(1.0 / max(n_features - 1, 1))

    # Mean, then reuse the centered value for the (unbiased / Bessel) variance.
    mean = jnp.sum(x, axis=-1, keepdims=True) * inv_n           # (R, 1)
    xc = x - mean                                               # (R, E)
    var = jnp.sum(xc * xc, axis=-1, keepdims=True) * inv_nm1    # (R, 1)
    std = jnp.sqrt(var)                                         # (R, 1)

    # eps OUTSIDE the sqrt, like the PyTorch module; divide -> EUP reciprocal.
    inv = pl.reciprocal(std + jnp.float32(eps), approx=False)   # (R, 1)

    # a2 * (x - mean) * inv + b2, gain folded into the broadcast scale.
    o_ref[...] = (xc * (inv * a) + b).astype(o_ref.dtype)


def _pick_block_rows(n_rows: int, n_features: int, itemsize: int,
                     max_rows: int = 1024, target_bytes: int = 4 << 20) -> int:
    """Row-block size: multiple of 8, a few MiB of VMEM per x block, <= max_rows."""
    rows_by_budget = max(8, target_bytes // max(1, n_features * itemsize))
    br = min(max_rows, rows_by_budget, _round_up(n_rows, 8))
    return max(8, (br // 8) * 8)


def layer_norm(x, a2, b2, *, eps: float = 1e-6, block_rows: int | None = None):
    """Pallas LayerNorm over the last axis of `x`. a2/b2 have shape (features,)."""
    orig_shape = x.shape
    orig_dtype = x.dtype
    E = orig_shape[-1]
    R = math.prod(orig_shape[:-1]) if len(orig_shape) > 1 else 1

    x2 = x.reshape(R, E)                      # no dtype cast here (saves HBM traffic)
    a = a2.reshape(1, E)
    b = b2.reshape(1, E)

    if block_rows is None:
        br = _pick_block_rows(R, E, jnp.dtype(orig_dtype).itemsize)
    else:
        br = max(8, (min(block_rows, _round_up(R, 8)) // 8) * 8)

    R_pad = _round_up(R, br)
    if R_pad != R:
        # Padded rows are computed (harmless: feature-axis stats never see padding
        # since the feature axis is never padded) and sliced off below.
        x2 = jnp.pad(x2, ((0, R_pad - R), (0, 0)))

    out = pl.pallas_call(
        functools.partial(layernorm_kernel, n_features=E, eps=eps),
        out_shape=jax.ShapeDtypeStruct((R_pad, E), orig_dtype),
        grid=(R_pad // br,),
        in_specs=[
            pl.BlockSpec((br, E), lambda i: (i, 0)),
            pl.BlockSpec((1, E), lambda i: (0, 0)),
            pl.BlockSpec((1, E), lambda i: (0, 0)),
        ],
        out_specs=pl.BlockSpec((br, E), lambda i: (i, 0)),
        compiler_params=pltpu.CompilerParams(
            dimension_semantics=("parallel",),
        ),
    )(x2, a, b)

    return out[:R].reshape(orig_shape)


def layer_norm_ref(x, a2, b2, eps=1e-6):
    """Pure-JAX reference with the exact PyTorch-module semantics."""
    x = x.astype(jnp.float32)
    mean = jnp.mean(x, axis=-1, keepdims=True)
    var = jnp.sum((x - mean) ** 2, axis=-1, keepdims=True) / (x.shape[-1] - 1)
    std = jnp.sqrt(var)
    return a2 * (x - mean) / (std + eps) + b2


if __name__ == "__main__":
    # Small shapes consistent with the module: (batch, seq, features).
    # features = 128 keeps the feature (lane) axis dense -> unmasked full-width stores.
    B, S, E = 2, 8, 128

    key = jax.random.PRNGKey(0)
    kx, ka, kb = jax.random.split(key, 3)
    x = jax.random.normal(kx, (B, S, E), jnp.float32)
    a2 = 1.0 + 0.1 * jax.random.normal(ka, (E,), jnp.float32)   # gain (~ones)
    b2 = 0.1 * jax.random.normal(kb, (E,), jnp.float32)         # bias (~zeros)

    out = layer_norm(x, a2, b2)
    out = jax.block_until_ready(out)

    ref = layer_norm_ref(x, a2, b2)
    assert out.shape == (B, S, E)
    assert out.dtype == x.dtype
    assert bool(jnp.all(jnp.isfinite(out)))
    assert bool(jnp.allclose(out, ref, rtol=1e-5, atol=1e-5)), \
        f"max abs err = {float(jnp.max(jnp.abs(out - ref)))}"
    print("KERNEL_OK")
</pallas_src>

<mosaic_0001>
module attributes {stable_mosaic.version = 11 : i64} {
  func.func @layernorm_kernel(%arg0: i32, %arg1: memref<16x128xf32, #tpu.memory_space<vmem>>, %arg2: memref<1x128xf32, #tpu.memory_space<vmem>>, %arg3: memref<1x128xf32, #tpu.memory_space<vmem>>, %arg4: memref<16x128xf32, #tpu.memory_space<vmem>>) attributes {dimension_semantics = [#tpu.dimension_semantics<parallel>], iteration_bounds = array<i64: 1>, scalar_prefetch = 0 : i64, scratch_operands = 0 : i64, tpu.core_type = #tpu.core_type<tc>, window_params = [{transform_indices = @transform_0, window_bounds = array<i64: 16, 128>}, {pipeline_mode = #tpu.pipeline_mode<synchronous>, transform_indices = @transform_1, window_bounds = array<i64: 1, 128>}, {pipeline_mode = #tpu.pipeline_mode<synchronous>, transform_indices = @transform_2, window_bounds = array<i64: 1, 128>}, {transform_indices = @transform_3, window_bounds = array<i64: 16, 128>}]} {
    %c0 = arith.constant 0 : index
    %c0_0 = arith.constant 0 : index
    %0 = vector.load %arg1[%c0, %c0_0] : memref<16x128xf32, #tpu.memory_space<vmem>>, vector<16x128xf32>
    %c0_1 = arith.constant 0 : index
    %c0_2 = arith.constant 0 : index
    %1 = vector.load %arg2[%c0_1, %c0_2] : memref<1x128xf32, #tpu.memory_space<vmem>>, vector<1x128xf32>
    %c0_3 = arith.constant 0 : index
    %c0_4 = arith.constant 0 : index
    %2 = vector.load %arg3[%c0_3, %c0_4] : memref<1x128xf32, #tpu.memory_space<vmem>>, vector<1x128xf32>
    %cst = arith.constant dense<0.000000e+00> : vector<16xf32>
    %3 = vector.multi_reduction <add>, %0, %cst [1] : vector<16x128xf32> to vector<16xf32>
    %4 = vector.shape_cast %3 : vector<16xf32> to vector<16x1xf32>
    %cst_5 = arith.constant 7.812500e-03 : f32
    %5 = vector.broadcast %cst_5 : f32 to vector<16x1xf32>
    %6 = arith.mulf %4, %5 : vector<16x1xf32>
    %7 = vector.broadcast %6 : vector<16x1xf32> to vector<16x128xf32>
    %8 = arith.subf %0, %7 : vector<16x128xf32>
    %9 = arith.mulf %8, %8 : vector<16x128xf32>
    %cst_6 = arith.constant dense<0.000000e+00> : vector<16xf32>
    %10 = vector.multi_reduction <add>, %9, %cst_6 [1] : vector<16x128xf32> to vector<16xf32>
    %11 = vector.shape_cast %10 : vector<16xf32> to vector<16x1xf32>
    %cst_7 = arith.constant 0.00787401571 : f32
    %12 = vector.broadcast %cst_7 : f32 to vector<16x1xf32>
    %13 = arith.mulf %11, %12 : vector<16x1xf32>
    %14 = math.sqrt %13 : vector<16x1xf32>
    %cst_8 = arith.constant 9.99999997E-7 : f32
    %15 = vector.broadcast %cst_8 : f32 to vector<16x1xf32>
    %16 = arith.addf %14, %15 : vector<16x1xf32>
    %17 = tpu.reciprocal %16 : vector<16x1xf32> -> vector<16x1xf32>
    %18 = vector.broadcast %17 : vector<16x1xf32> to vector<16x128xf32>
    %19 = vector.broadcast %1 : vector<1x128xf32> to vector<16x128xf32>
    %20 = arith.mulf %18, %19 : vector<16x128xf32>
    %21 = arith.mulf %8, %20 : vector<16x128xf32>
    %22 = vector.broadcast %2 : vector<1x128xf32> to vector<16x128xf32>
    %23 = arith.addf %21, %22 : vector<16x128xf32>
    %c0_9 = arith.constant 0 : index
    %c0_10 = arith.constant 0 : index
    %24 = vector.load %arg4[%c0_9, %c0_10] : memref<16x128xf32, #tpu.memory_space<vmem>>, vector<16x128xf32>
    tpu.vector_store %arg4[%c0_9, %c0_10], %23 {strides = array<i32>} : memref<16x128xf32, #tpu.memory_space<vmem>>, vector<16x128xf32>,
    return
  }
  func.func @transform_0(%arg0: i32) -> (i32, i32) {
    %c0_i32 = arith.constant 0 : i32
    %c0_i32_0 = arith.constant 0 : i32
    return %arg0, %c0_i32 : i32, i32
  }
  func.func @transform_1(%arg0: i32) -> (i32, i32) {
    %c0_i32 = arith.constant 0 : i32
    %c0_i32_0 = arith.constant 0 : i32
    %c0_i32_1 = arith.constant 0 : i32
    return %c0_i32, %c0_i32_0 : i32, i32
  }
  func.func @transform_2(%arg0: i32) -> (i32, i32) {
    %c0_i32 = arith.constant 0 : i32
    %c0_i32_0 = arith.constant 0 : i32
    %c0_i32_1 = arith.constant 0 : i32
    return %c0_i32, %c0_i32_0 : i32, i32
  }
  func.func @transform_3(%arg0: i32) -> (i32, i32) {
    %c0_i32 = arith.constant 0 : i32
    %c0_i32_0 = arith.constant 0 : i32
    return %arg0, %c0_i32 : i32, i32
  }
}

</mosaic_0001>

<bundles_post_ra>
// kernel: tpu_custom_call.1
= control target key start
LH: loop header
LB: loop body
LE: loop exit
PB: predicated region body
PF: predicated region fallthrough
CT: control target
= control target key end

     0   :  { %8 = vsyncpa [#allocation3], 0  ;;  %s226_s0 = inlined_call_operand.hbm [shape: f32[16,128], index: 0, kind: input, shape index: {}]   ;;  %s227_s1 = inlined_call_operand.vmem [shape: f32[1,128], index: 1, kind: input, shape index: {}]   ;;  %s228_s2 = inlined_call_operand.vmem [shape: f32[1,128], index: 2, kind: input, shape index: {}]   ;;  %s229_s3 = inlined_call_operand.hbm [shape: f32[16,128], index: 3, kind: output, shape index: {}]  }
   0x1   :  { %9 = vsyncpa [#allocation4], 0  ;;  %s166_s12 = smov [#allocation2]   ;;  %s118_s16 = scalar_lea.hbm %s226_s0, 256 }
   0x2   :  { %s15_s13 = sshll.u32 %s166_s12, 4  ;;  %p119_p0 = scmp.ne.s32.totalorder %s226_s0, %s118_s16  ;;  %s16_s13 = int_to_ptr.vmem [resolvable:$true] %s15_s13 }
   0x3   :  { %p122_p1 = scmp.lt.u32.totalorder %s118_s16, %s226_s0 }
   0x5   :  { %p124_p2 = pnand %p122_p1, %p119_p0 }
   0x7   :  { %127 = shalt.err (!%p124_p2)
}
   0x8   :  { %s128_s21 = scalar_lea.vmem %s16_s13, 256  ;;  %p133_p4 = scmp.lt.s32.totalorder %s16_s13, %s16_s13 }
   0x9   :  { %p129_p3 = scmp.ne.s32.totalorder %s16_s13, %s128_s21  ;;  %p134_p5 = scmp.lt.s32.totalorder %s128_s21, %s128_s21 }
   0xb   :  { %p135_p6 = por %p134_p5, %p133_p4 }
   0xd   :  { %p136_p7 = pnand %p135_p6, %p129_p3 }
   0xf   :  { %139 = shalt.err (!%p136_p7)
}
  0x10   :  { %s167_s22 = smov 128   ;;  %s168_s23 = smov 8  }
  0x11   :  { %21 = dma.hbm_to_vmem [thread:$0]  %s226_s0, 256, %s16_s13, [#allocation3], %s167_s22, %s167_s22, %s168_s23  }
  0x12   :  { %162 = dma.done.wait [#allocation3], 256  }
  0x13   :  { %163 = vsyncadd [#allocation3], 4294967040  ;;  %v29_v0 = vld [vmem:[#allocation2] sm:$0xff]  ;;  %v30_v1 = vld [vmem:[#allocation2 + $0x8] sm:$0xff]  ;;  %s169_s29 = smov [#allocation5]  }
  0x14   :  { %33 = vadd.xlane.f32.xlu0 %v29_v0  ;;  %v104_v26 = vld [vmem:[%s227_s1] ss:$0 sm:$0xff]  ;;  %s92_s30 = sshll.u32 %s169_s29, 4  ;;  %s93_s30 = int_to_ptr.vmem [resolvable:$true] %s92_s30 }
  0x15   :  { %v105_v29 = vld [vmem:[%s228_s2] ss:$0 sm:$0xff]  ;;  %s140_s4 = scalar_lea.vmem %s93_s30, 256  ;;  %p145_p9 = scmp.lt.s32.totalorder %s93_s30, %s93_s30 }
  0x16   :  { %p141_p8 = scmp.ne.s32.totalorder %s93_s30, %s140_s4  ;;  %p146_p10 = scmp.lt.s32.totalorder %s140_s4, %s140_s4 }
  0x18   :  { %35 = vadd.xlane.f32.xlu0 %v30_v1  ;;  %p147_p11 = por %p146_p10, %p145_p9 }
  0x1a   :  { %p148_p12 = pnand %p147_p11, %p141_p8 }
  0xa1   :  { %v34_v2 = vpop.xlane.xlu0 %33 }
  0xa2   :  { %v37_v3 = vmul.f32 0.0078125, %v34_v2 }
  0xa4   :  { %v39_v4 = vsub.f32 %v29_v0, %v37_v3 }
  0xa5   :  { %v36_v5 = vpop.xlane.xlu0 %35 }
  0xa6   :  { %v38_v6 = vmul.f32 0.0078125, %v36_v5  ;;  %v41_v7 = vmul.f32 %v39_v4, %v39_v4 }
  0xa8   :  { %v40_v8 = vsub.f32 %v30_v1, %v38_v6  ;;  %43 = vadd.xlane.f32.xlu1 %v41_v7 }
  0xaa   :  { %v42_v9 = vmul.f32 %v40_v8, %v40_v8 }
  0xac   :  { %45 = vadd.xlane.f32.xlu1 %v42_v9 }
 0x135   :  { %v44_v10 = vpop.xlane.xlu1 %43 }
 0x136   :  { %v47_v11 = vmul.f32 0.007874016, %v44_v10 }
 0x138   :  { %110 = vrsqrt.f32 %v47_v11  ;;  %vm51_vm0 = vcmp.eq.f32.partialorder %v47_v11, inf  ;;  %v54_v16 = vand.u32 2147483648, %v47_v11  ;;  %vm53_vm1 = vcmp.eq.f32.partialorder %v47_v11, 0.0 }
 0x139   :  { %v46_v12 = vpop.xlane.xlu1 %45 }
 0x13a   :  { %v48_v13 = vmul.f32 0.007874016, %v46_v12 }
 0x13c   :  { %112 = vrsqrt.f32 %v48_v13  ;;  %vm58_vm2 = vcmp.eq.f32.partialorder %v48_v13, inf  ;;  %v61_v22 = vand.u32 2147483648, %v48_v13  ;;  %vm60_vm3 = vcmp.eq.f32.partialorder %v48_v13, 0.0 }
 0x142   :  { %v111_v14 = vpop.eup %110 }
 0x143   :  { %v50_v15 = vmul.f32 %v111_v14, %v47_v11 }
 0x145   :  { %v52_v17 = vsel %vm51_vm0, %v47_v11, %v50_v15 }
 0x146   :  { %v113_v18 = vpop.eup %112  ;;  %v55_v19 = vsel %vm53_vm1, %v54_v16, %v52_v17 }
 0x147   :  { %v57_v20 = vmul.f32 %v113_v18, %v48_v13  ;;  %v63_v21 = vadd.f32 1e-06, %v55_v19 }
 0x149   :  { %v59_v23 = vsel %vm58_vm2, %v48_v13, %v57_v20  ;;  %114 = vrcp.f32 %v63_v21 }
 0x14a   :  { %v62_v24 = vsel %vm60_vm3, %v61_v22, %v59_v23 }
 0x14b   :  { %v64_v25 = vadd.f32 1e-06, %v62_v24 }
 0x14d   :  { %116 = vrcp.f32 %v64_v25 }
 0x153   :  { %v115_v27 = vpop.eup %114 }
 0x154   :  { %v73_v28 = vmul.f32 %v115_v27, %v104_v26 }
 0x156   :  { %v75_v30 = vmul.f32 %v73_v28, %v39_v4 }
 0x157   :  { %v117_v31 = vpop.eup %116 }
 0x158   :  { %v74_v32 = vmul.f32 %v117_v31, %v104_v26  ;;  %v83_v33 = vadd.f32 %v105_v29, %v75_v30 }
 0x15a   :  { %v76_v34 = vmul.f32 %v74_v32, %v40_v8  ;;  %85 = vst [vmem:[#allocation5] sm:$0xff] %v83_v33 }
 0x15c   :  { %v84_v35 = vadd.f32 %v105_v29, %v76_v34 }
 0x15e   :  { %86 = vst [vmem:[#allocation5 + $0x8] sm:$0xff] %v84_v35 }
 0x15f   :  { %151 = shalt.err (!%p148_p12)
}
 0x160   :  { %s152_s5 = scalar_lea.hbm %s229_s3, 256 }
 0x161   :  { %p153_p13 = scmp.ne.s32.totalorder %s229_s3, %s152_s5  ;;  %p156_p0 = scmp.lt.u32.totalorder %s152_s5, %s229_s3 }
 0x163   :  { %p158_p1 = pnand %p156_p0, %p153_p13 }
 0x165   :  { %161 = shalt.err (!%p158_p1)
}
 0x166   :  { %98 = dma.vmem_to_hbm [thread:$0]  %s93_s30, 256, %s229_s3, [#allocation4], %s167_s22, %s167_s22, %s168_s23  }
 0x167   :  { %164 = dma.done.wait [#allocation4], 256  }
 0x168   :  { %165 = vsyncadd [#allocation4], 4294967040 }
 0x169   :  { %102 = vsyncpa [#allocation3], 1 }
 0x16a   :  { %103 = vsyncpa [#allocation4], 1 }

</bundles_post_ra>
